<compile_context>
chip_gen: v6e
topology: v6e:2x2x1
jax: 0.10.0
libtpu: 0.0.40
codegen_flags: <defaults>
</compile_context>

<pallas_src>
import functools

import jax
import jax.numpy as jnp
from jax import lax
from jax.experimental import pallas as pl
from jax.experimental.pallas import tpu as pltpu


def _conv_stats_kernel(w_ref, a00_ref, a01_ref, a10_ref, a11_ref,
                       sum_ref, ssq_ref):
    """Phase 1: y = sum_taps W_tap @ slab_tap (bf16 MXU, f32 acc); emit partial
    per-channel sum and sum-of-squares for this (image, pixel-tile)."""
    w = w_ref[...]                                               # (4, Cout, Cin) bf16
    y = jnp.dot(w[0], a00_ref[0], preferred_element_type=jnp.float32)
    y += jnp.dot(w[1], a01_ref[0], preferred_element_type=jnp.float32)
    y += jnp.dot(w[2], a10_ref[0], preferred_element_type=jnp.float32)
    y += jnp.dot(w[3], a11_ref[0], preferred_element_type=jnp.float32)
    # f32 stats (v5e has no bf16 VPU); sum/sumsq instead of a centered 2nd pass.
    sum_ref[0, 0] = jnp.sum(y, axis=1, keepdims=True)            # (Cout, 1)
    ssq_ref[0, 0] = jnp.sum(y * y, axis=1, keepdims=True)        # (Cout, 1)


def _conv_norm_kernel(w_ref, a00_ref, a01_ref, a10_ref, a11_ref,
                      scale_ref, shift_ref, o_ref):
    """Phase 2: recompute y and apply the fused BN affine o = y*scale + shift."""
    w = w_ref[...]
    y = jnp.dot(w[0], a00_ref[0], preferred_element_type=jnp.float32)
    y += jnp.dot(w[1], a01_ref[0], preferred_element_type=jnp.float32)
    y += jnp.dot(w[2], a10_ref[0], preferred_element_type=jnp.float32)
    y += jnp.dot(w[3], a11_ref[0], preferred_element_type=jnp.float32)
    o_ref[0] = y * scale_ref[...] + shift_ref[...]               # (Cout, TILE_P) f32


def _pick_tile(p, max_tile=2048):
    """Pixel-tile size: full row if small, else a 128-multiple tile (pad P up).
    Block footprint at 2048 is <1 MiB, safe for v7x's 64 MiB VMEM; raise
    max_tile on 128 MiB parts (v5e/v6e) to amortize per-step overhead."""
    if p <= max_tile:
        return p, p
    p_pad = pl.cdiv(p, max_tile) * max_tile
    return max_tile, p_pad


def patch_embedding_block(x, weight, bias, gamma, beta, *, stride, eps=1e-5):
    """x: (N, Cin, H, W) f32. weight: (Cout, Cin, 2, 2) (PyTorch OIHW). Returns NCHW."""
    del bias  # cancels exactly under train-mode BatchNorm -> dead work, dropped.
    N, Cin, H, W = x.shape
    Cout = weight.shape[0]
    kH = kW = 2
    Ho = (H - kH) // stride + 1
    Wo = (W - kW) // stride + 1
    P = Ho * Wo
    TILE_P, P_pad = _pick_tile(P)
    T = P_pad // TILE_P

    # --- glue: four (kh, kw) strided slabs, pure reshape to (N, Cin, P), bf16
    #     MXU operands.  No im2col matrix is materialized. ---
    slabs = []
    for kh in range(kH):
        for kw in range(kW):
            sl = x[:, :, kh:kh + stride * (Ho - 1) + 1:stride,
                         kw:kw + stride * (Wo - 1) + 1:stride]   # (N, Cin, Ho, Wo)
            sl = sl.reshape(N, Cin, P)
            if P_pad != P:
                # zero pad: contributes 0 to sum/sumsq, sliced off at the end.
                sl = jnp.pad(sl, ((0, 0), (0, 0), (0, P_pad - P)))
            slabs.append(sl.astype(jnp.bfloat16))

    # weight (Cout, Cin, kh, kw) -> (4, Cout, Cin) with tap index kh*2 + kw.
    w_stk = weight.transpose(2, 3, 0, 1).reshape(kH * kW, Cout, Cin)
    w_stk = w_stk.astype(jnp.bfloat16)

    grid = (N, T)
    cparams = pltpu.CompilerParams(
        dimension_semantics=("parallel", "parallel"),
        vmem_limit_bytes=32 * 1024 * 1024)

    w_spec = pl.BlockSpec((kH * kW, Cout, Cin), lambda n, t: (0, 0, 0))
    slab_spec = pl.BlockSpec((1, Cin, TILE_P), lambda n, t: (n, 0, t))
    vec_spec = pl.BlockSpec((Cout, 1), lambda n, t: (0, 0))
    stat_spec = pl.BlockSpec((1, 1, Cout, 1), lambda n, t: (n, t, 0, 0))
    out_spec = pl.BlockSpec((1, Cout, TILE_P), lambda n, t: (n, 0, t))

    # --- phase 1: per-tile partial BN statistics ---
    psum, pssq = pl.pallas_call(
        _conv_stats_kernel,
        out_shape=(jax.ShapeDtypeStruct((N, T, Cout, 1), jnp.float32),
                   jax.ShapeDtypeStruct((N, T, Cout, 1), jnp.float32)),
        grid=grid,
        in_specs=[w_spec] + [slab_spec] * 4,
        out_specs=(stat_spec, stat_spec),
        compiler_params=cparams,
    )(w_stk, *slabs)

    # --- tiny O(Cout) glue: global (over all N*Ho*Wo) mean/var -> scale/shift ---
    count = jnp.float32(N * P)                       # true count; padding added 0
    total_sum = jnp.sum(psum, axis=(0, 1))[:, 0]     # (Cout,)
    total_ssq = jnp.sum(pssq, axis=(0, 1))[:, 0]
    mean = total_sum / count
    var = total_ssq / count - mean * mean            # biased, train-mode BN
    scale = gamma.astype(jnp.float32) * lax.rsqrt(var + eps)
    shift = beta.astype(jnp.float32) - mean * scale
    scale2 = scale.reshape(Cout, 1)
    shift2 = shift.reshape(Cout, 1)

    # --- phase 2: recompute conv and apply fused affine; output is already in
    #     (N, Cout, Ho*Wo) layout so no transpose is needed afterwards. ---
    out_flat = pl.pallas_call(
        _conv_norm_kernel,
        out_shape=jax.ShapeDtypeStruct((N, Cout, P_pad), jnp.float32),
        grid=grid,
        in_specs=[w_spec] + [slab_spec] * 4 + [vec_spec, vec_spec],
        out_specs=out_spec,
        compiler_params=cparams,
    )(w_stk, *slabs, scale2, shift2)

    if P_pad != P:
        out_flat = out_flat[:, :, :P]
    return out_flat.reshape(N, Cout, Ho, Wo)         # pure reshape -> NCHW


def _reference(x, weight, bias, gamma, beta, *, stride, eps=1e-5):
    """Pure-JAX reference matching PyTorch Conv2d + BatchNorm2d (train mode)."""
    y = lax.conv_general_dilated(
        x, weight, window_strides=(stride, stride), padding="VALID",
        dimension_numbers=("NCHW", "OIHW", "NCHW"),
        precision=lax.Precision.HIGHEST)
    y = y + bias.reshape(1, -1, 1, 1)
    mean = jnp.mean(y, axis=(0, 2, 3), keepdims=True)
    var = jnp.mean((y - mean) ** 2, axis=(0, 2, 3), keepdims=True)
    y = (y - mean) / jnp.sqrt(var + eps)
    return y * gamma.reshape(1, -1, 1, 1) + beta.reshape(1, -1, 1, 1)


if __name__ == "__main__":
    key = jax.random.PRNGKey(0)
    k_x, k_w, k_b, k_g, k_be = jax.random.split(key, 5)

    N, Cin, H, W = 2, 4, 16, 16
    Cout = 32
    stride = 2

    x = jax.random.normal(k_x, (N, Cin, H, W), dtype=jnp.float32)
    weight = jax.random.normal(k_w, (Cout, Cin, 2, 2), dtype=jnp.float32) * 0.1
    bias = jax.random.normal(k_b, (Cout,), dtype=jnp.float32) * 0.05
    gamma = 1.0 + 0.1 * jax.random.normal(k_g, (Cout,), dtype=jnp.float32)
    beta = 0.1 * jax.random.normal(k_be, (Cout,), dtype=jnp.float32)

    out = patch_embedding_block(x, weight, bias, gamma, beta, stride=stride)
    out = jax.block_until_ready(out)

    # The kernel feeds the MXU bf16 operands (with f32 accumulation), so compare
    # against an f32 reference built from the same bf16-rounded operands: the
    # remaining difference is only f32 accumulation order / BN arithmetic, and
    # the check stays tight.  The reference still adds the conv bias, which the
    # kernel drops -- it must (and does) cancel under train-mode BatchNorm.
    x_r = x.astype(jnp.bfloat16).astype(jnp.float32)
    w_r = weight.astype(jnp.bfloat16).astype(jnp.float32)
    ref = _reference(x_r, w_r, bias, gamma, beta, stride=stride)

    Ho = (H - 2) // stride + 1
    Wo = (W - 2) // stride + 1
    assert out.shape == (N, Cout, Ho, Wo)
    err = float(jnp.max(jnp.abs(out - ref)))
    assert jnp.allclose(out, ref, atol=1e-3, rtol=1e-3), err

    print("KERNEL_OK")
</pallas_src>

<mosaic_0001>
module attributes {stable_mosaic.version = 11 : i64} {
  func.func @_conv_stats_kernel(%arg0: i32, %arg1: i32, %arg2: memref<4x32x4xbf16, #tpu.memory_space<vmem>>, %arg3: memref<1x4x64xbf16, #tpu.memory_space<vmem>>, %arg4: memref<1x4x64xbf16, #tpu.memory_space<vmem>>, %arg5: memref<1x4x64xbf16, #tpu.memory_space<vmem>>, %arg6: memref<1x4x64xbf16, #tpu.memory_space<vmem>>, %arg7: memref<1x1x32x1xf32, #tpu.memory_space<vmem>>, %arg8: memref<1x1x32x1xf32, #tpu.memory_space<vmem>>) attributes {dimension_semantics = [#tpu.dimension_semantics<parallel>, #tpu.dimension_semantics<parallel>], iteration_bounds = array<i64: 2, 1>, scalar_prefetch = 0 : i64, scratch_operands = 0 : i64, tpu.core_type = #tpu.core_type<tc>, window_params = [{pipeline_mode = #tpu.pipeline_mode<synchronous>, transform_indices = @transform_0, window_bounds = array<i64: 4, 32, 4>}, {transform_indices = @transform_1, window_bounds = array<i64: 1, 4, 64>}, {transform_indices = @transform_2, window_bounds = array<i64: 1, 4, 64>}, {transform_indices = @transform_3, window_bounds = array<i64: 1, 4, 64>}, {transform_indices = @transform_4, window_bounds = array<i64: 1, 4, 64>}, {transform_indices = @transform_5, window_bounds = array<i64: 1, 1, 32, 1>}, {transform_indices = @transform_6, window_bounds = array<i64: 1, 1, 32, 1>}]} {
    %c0 = arith.constant 0 : index
    %c0_0 = arith.constant 0 : index
    %c0_1 = arith.constant 0 : index
    %0 = vector.load %arg2[%c0, %c0_0, %c0_1] : memref<4x32x4xbf16, #tpu.memory_space<vmem>>, vector<4x32x4xbf16>
    %1 = vector.extract_strided_slice %0 {offsets = [0, 0, 0], sizes = [1, 32, 4], strides = [1, 1, 1]} : vector<4x32x4xbf16> to vector<1x32x4xbf16>
    %2 = vector.shape_cast %1 : vector<1x32x4xbf16> to vector<32x4xbf16>
    %c0_2 = arith.constant 0 : index
    %c0_3 = arith.constant 0 : index
    %c0_4 = arith.constant 0 : index
    %3 = vector.load %arg3[%c0_2, %c0_3, %c0_4] : memref<1x4x64xbf16, #tpu.memory_space<vmem>>, vector<1x4x64xbf16>
    %4 = vector.shape_cast %3 : vector<1x4x64xbf16> to vector<4x64xbf16>
    %cst = arith.constant dense<0.000000e+00> : vector<32x64xf32>
    %5 = tpu.matmul %2, %4, %cst {dimension_numbers = #tpu.dot_dimension_numbers<[1], [0], [0], [1], [0, 0, 1, 1], [], []>} : vector<32x4xbf16>, vector<4x64xbf16>, vector<32x64xf32> -> vector<32x64xf32>
    %6 = vector.extract_strided_slice %0 {offsets = [1, 0, 0], sizes = [1, 32, 4], strides = [1, 1, 1]} : vector<4x32x4xbf16> to vector<1x32x4xbf16>
    %7 = vector.shape_cast %6 : vector<1x32x4xbf16> to vector<32x4xbf16>
    %c0_5 = arith.constant 0 : index
    %c0_6 = arith.constant 0 : index
    %c0_7 = arith.constant 0 : index
    %8 = vector.load %arg4[%c0_5, %c0_6, %c0_7] : memref<1x4x64xbf16, #tpu.memory_space<vmem>>, vector<1x4x64xbf16>
    %9 = vector.shape_cast %8 : vector<1x4x64xbf16> to vector<4x64xbf16>
    %cst_8 = arith.constant dense<0.000000e+00> : vector<32x64xf32>
    %10 = tpu.matmul %7, %9, %cst_8 {dimension_numbers = #tpu.dot_dimension_numbers<[1], [0], [0], [1], [0, 0, 1, 1], [], []>} : vector<32x4xbf16>, vector<4x64xbf16>, vector<32x64xf32> -> vector<32x64xf32>
    %11 = arith.addf %5, %10 : vector<32x64xf32>
    %12 = vector.extract_strided_slice %0 {offsets = [2, 0, 0], sizes = [1, 32, 4], strides = [1, 1, 1]} : vector<4x32x4xbf16> to vector<1x32x4xbf16>
    %13 = vector.shape_cast %12 : vector<1x32x4xbf16> to vector<32x4xbf16>
    %c0_9 = arith.constant 0 : index
    %c0_10 = arith.constant 0 : index
    %c0_11 = arith.constant 0 : index
    %14 = vector.load %arg5[%c0_9, %c0_10, %c0_11] : memref<1x4x64xbf16, #tpu.memory_space<vmem>>, vector<1x4x64xbf16>
    %15 = vector.shape_cast %14 : vector<1x4x64xbf16> to vector<4x64xbf16>
    %cst_12 = arith.constant dense<0.000000e+00> : vector<32x64xf32>
    %16 = tpu.matmul %13, %15, %cst_12 {dimension_numbers = #tpu.dot_dimension_numbers<[1], [0], [0], [1], [0, 0, 1, 1], [], []>} : vector<32x4xbf16>, vector<4x64xbf16>, vector<32x64xf32> -> vector<32x64xf32>
    %17 = arith.addf %11, %16 : vector<32x64xf32>
    %18 = vector.extract_strided_slice %0 {offsets = [3, 0, 0], sizes = [1, 32, 4], strides = [1, 1, 1]} : vector<4x32x4xbf16> to vector<1x32x4xbf16>
    %19 = vector.shape_cast %18 : vector<1x32x4xbf16> to vector<32x4xbf16>
    %c0_13 = arith.constant 0 : index
    %c0_14 = arith.constant 0 : index
    %c0_15 = arith.constant 0 : index
    %20 = vector.load %arg6[%c0_13, %c0_14, %c0_15] : memref<1x4x64xbf16, #tpu.memory_space<vmem>>, vector<1x4x64xbf16>
    %21 = vector.shape_cast %20 : vector<1x4x64xbf16> to vector<4x64xbf16>
    %cst_16 = arith.constant dense<0.000000e+00> : vector<32x64xf32>
    %22 = tpu.matmul %19, %21, %cst_16 {dimension_numbers = #tpu.dot_dimension_numbers<[1], [0], [0], [1], [0, 0, 1, 1], [], []>} : vector<32x4xbf16>, vector<4x64xbf16>, vector<32x64xf32> -> vector<32x64xf32>
    %23 = arith.addf %17, %22 : vector<32x64xf32>
    %cst_17 = arith.constant dense<0.000000e+00> : vector<32xf32>
    %24 = vector.multi_reduction <add>, %23, %cst_17 [1] : vector<32x64xf32> to vector<32xf32>
    %25 = vector.shape_cast %24 : vector<32xf32> to vector<32x1xf32>
    %c0_18 = arith.constant 0 : index
    %c0_19 = arith.constant 0 : index
    %c0_20 = arith.constant 0 : index
    %c0_21 = arith.constant 0 : index
    %26 = vector.load %arg7[%c0_18, %c0_19, %c0_20, %c0_21] : memref<1x1x32x1xf32, #tpu.memory_space<vmem>>, vector<1x1x32x1xf32>
    %27 = vector.shape_cast %26 : vector<1x1x32x1xf32> to vector<32x1xf32>
    %28 = vector.shape_cast %25 : vector<32x1xf32> to vector<1x1x32x1xf32>
    tpu.vector_store %arg7[%c0_18, %c0_19, %c0_20, %c0_21], %28 {strides = array<i32>} : memref<1x1x32x1xf32, #tpu.memory_space<vmem>>, vector<1x1x32x1xf32>,
    %29 = arith.mulf %23, %23 : vector<32x64xf32>
    %cst_22 = arith.constant dense<0.000000e+00> : vector<32xf32>
    %30 = vector.multi_reduction <add>, %29, %cst_22 [1] : vector<32x64xf32> to vector<32xf32>
    %31 = vector.shape_cast %30 : vector<32xf32> to vector<32x1xf32>
    %c0_23 = arith.constant 0 : index
    %c0_24 = arith.constant 0 : index
    %c0_25 = arith.constant 0 : index
    %c0_26 = arith.constant 0 : index
    %32 = vector.load %arg8[%c0_23, %c0_24, %c0_25, %c0_26] : memref<1x1x32x1xf32, #tpu.memory_space<vmem>>, vector<1x1x32x1xf32>
    %33 = vector.shape_cast %32 : vector<1x1x32x1xf32> to vector<32x1xf32>
    %34 = vector.shape_cast %31 : vector<32x1xf32> to vector<1x1x32x1xf32>
    tpu.vector_store %arg8[%c0_23, %c0_24, %c0_25, %c0_26], %34 {strides = array<i32>} : memref<1x1x32x1xf32, #tpu.memory_space<vmem>>, vector<1x1x32x1xf32>,
    return
  }
  func.func @transform_0(%arg0: i32, %arg1: i32) -> (i32, i32, i32) {
    %c0_i32 = arith.constant 0 : i32
    %c0_i32_0 = arith.constant 0 : i32
    %c0_i32_1 = arith.constant 0 : i32
    %c0_i32_2 = arith.constant 0 : i32
    return %c0_i32, %c0_i32_0, %c0_i32_1 : i32, i32, i32
  }
  func.func @transform_1(%arg0: i32, %arg1: i32) -> (i32, i32, i32) {
    %c0_i32 = arith.constant 0 : i32
    %c0_i32_0 = arith.constant 0 : i32
    return %arg0, %c0_i32, %arg1 : i32, i32, i32
  }
  func.func @transform_2(%arg0: i32, %arg1: i32) -> (i32, i32, i32) {
    %c0_i32 = arith.constant 0 : i32
    %c0_i32_0 = arith.constant 0 : i32
    return %arg0, %c0_i32, %arg1 : i32, i32, i32
  }
  func.func @transform_3(%arg0: i32, %arg1: i32) -> (i32, i32, i32) {
    %c0_i32 = arith.constant 0 : i32
    %c0_i32_0 = arith.constant 0 : i32
    return %arg0, %c0_i32, %arg1 : i32, i32, i32
  }
  func.func @transform_4(%arg0: i32, %arg1: i32) -> (i32, i32, i32) {
    %c0_i32 = arith.constant 0 : i32
    %c0_i32_0 = arith.constant 0 : i32
    return %arg0, %c0_i32, %arg1 : i32, i32, i32
  }
  func.func @transform_5(%arg0: i32, %arg1: i32) -> (i32, i32, i32, i32) {
    %c0_i32 = arith.constant 0 : i32
    %c0_i32_0 = arith.constant 0 : i32
    %c0_i32_1 = arith.constant 0 : i32
    return %arg0, %arg1, %c0_i32, %c0_i32_0 : i32, i32, i32, i32
  }
  func.func @transform_6(%arg0: i32, %arg1: i32) -> (i32, i32, i32, i32) {
    %c0_i32 = arith.constant 0 : i32
    %c0_i32_0 = arith.constant 0 : i32
    %c0_i32_1 = arith.constant 0 : i32
    return %arg0, %arg1, %c0_i32, %c0_i32_0 : i32, i32, i32, i32
  }
}

</mosaic_0001>

<bundles_post_ra>
// kernel: tpu_custom_call.1
= control target key start
LH: loop header
LB: loop body
LE: loop exit
PB: predicated region body
PF: predicated region fallthrough
CT: control target
= control target key end

     0   :  { %s1078_s21 = smov 0   ;;  %s1080_s22 = smov 0   ;;  %s1183_s0 = inlined_call_operand.vmem [shape: bf16[4,32,4], index: 0, kind: input, shape index: {}]   ;;  %s1184_s1 = inlined_call_operand.vmem [shape: bf16[2,4,64], index: 1, kind: input, shape index: {}]   ;;  %s1185_s2 = inlined_call_operand.vmem [shape: bf16[2,4,64], index: 2, kind: input, shape index: {}]   ;;  %s1186_s3 = inlined_call_operand.vmem [shape: bf16[2,4,64], index: 3, kind: input, shape index: {}]   ;;  %s1187_s4 = inlined_call_operand.vmem [shape: bf16[2,4,64], index: 4, kind: input, shape index: {}]   ;;  %s1188_s5 = inlined_call_operand.vmem [shape: f32[2,1,32,1], index: 5, kind: output, shape index: {0}]   ;;  %s1189_s6 = inlined_call_operand.vmem [shape: f32[2,1,32,1], index: 6, kind: output, shape index: {1}]  }
   0x1   :  { %s1082_s23 = smov 0  }
   0x2 LB: > { %s29_s24 = sadd.s32 1, %s1037_s22  ;;  %p918_p0 = scmp.ge.s32.totalorder %s1041_s23, 1  ;;  %s1041_s23 = sphi %s1082_s23, %s17_s23   ;;  %s1037_s22 = sphi %s1080_s22, %s1191_s22   ;;  %s1033_s21 = sphi %s1078_s21, %s1190_s21  }
   0x3   : > { %p31_p1 = scmp.ge.s32.totalorder %s29_s24, 2  ;;  %p277_p2 = scmp.lt.s32.totalorder %s1041_s23, 3 }
   0x5   : > { %s1193_s24 = smov (%p31_p1, %s29_s24), 0  ;;  %p278_p3 = pnand %p918_p0, %p277_p2 }
   0x6   : > { %p343_p4 = scmp.lt.s32.totalorder (!%p278_p3), %s1033_s21, 1 }
   0x7   : > { %281 = sbr.rel (%p278_p3) target bundleno = 379 (0x17b), region = 40 }
   0xc   : > { %v1011_v0 = vld [vmem:[%s1183_s0 + $0x10] sm:$0xff]   ;;  %vm418_vm0 = vcmask 31744   ;;  %s1195_s21 = smov (!%p343_p4, %s1033_s21), 1  ;;  %v1012_v1 = vld [vmem:[%s1183_s0] sm:$0xff]   ;;  %vm425_vm1 = vcmask 1041408   ;;  %v1013_v2 = vld [vmem:[%s1183_s0 + $0x18] sm:$0xff]  }
   0xd   : > { %961 = vmatprep.mubr.msk.bf16.mxu0 %vm418_vm0, %v1011_v0  ;;  %s919_s29 = sshll.u32 %s1195_s21, 1  ;;  %967 = vmatprep.mubr.msk.bf16.mxu1 %vm418_vm0, %v1012_v1  ;;  %v1014_v5 = vld [vmem:[%s1183_s0 + $0x8] sm:$0xff]   ;;  %v1015_v10 = vld [vmem:[%s1183_s0 + $0x20] sm:$0xff]   ;;  %v1016_v11 = vld [vmem:[%s1183_s0 + $0x30] sm:$0xff]   ;;  %vm692_vm2 = vcmask 523264   ;;  %s945_s10 = sshll.u32 %s1195_s21, 5 }
   0xe   : > { %s356_s8 = scalar_lea.vmem %s1185_s2, %s919_s29  ;;  %s349_s11 = scalar_lea.vmem %s1184_s1, %s919_s29  ;;  %v1017_v14 = vld [vmem:[%s1183_s0 + $0x28] sm:$0xff]   ;;  %v1018_v15 = vld [vmem:[%s1183_s0 + $0x38] sm:$0xff]   ;;  %vm705_vm3 = vcmask 7168  }
   0xf   : > { %v407_v3 = vld [vmem:[%s356_s8] sm:$0x3]  ;;  %s363_s18 = scalar_lea.vmem %s1186_s3, %s919_s29  ;;  %s370_s25 = scalar_lea.vmem %s1187_s4, %s919_s29 }
  0x10   : > { %v406_v4 = vld [vmem:[%s349_s11] sm:$0x3]  ;;  %983 = vmatprep.subr.msk.bf16.mxu0 %vm425_vm1, %v407_v3  ;;  %v427_v6 = vsel %vm425_vm1, %v407_v3, 0  ;;  %s379_s13 = scalar_lea.vmem %s1188_s5, %s945_s10  ;;  %s388_s16 = scalar_lea.vmem %s1189_s6, %s945_s10 }
  0x11   : > { %984 = vmatprep.subr.msk.bf16.mxu1 %vm425_vm1, %v406_v4  ;;  %v495_v7 = vsel %vm425_vm1, %v406_v4, 0  ;;  %v546_v8 = vld [vmem:[%s363_s18] sm:$0x3]  ;;  %960 = vmatpush3.bf16.msra.mxu0 %v427_v6 }
  0x12   : > { %v619_v9 = vld [vmem:[%s370_s25] sm:$0x3]  ;;  %966 = vmatpush3.bf16.msra.mxu1 %v495_v7  ;;  %985 = vmatprep.subr.msk.bf16.mxu0 %vm425_vm1, %v546_v8  ;;  %v564_v12 = vsel %vm425_vm1, %v546_v8, 0 }
  0x13   : > { %986 = vmatprep.subr.msk.bf16.mxu1 %vm425_vm1, %v619_v9  ;;  %v637_v13 = vsel %vm425_vm1, %v619_v9, 0 }
  0x14   : > { %962 = vmatmul.mubr.msk.bf16.vlgmr.msra.gmra.mxu0 %vm418_vm0, %v1013_v2 }
  0x15   : > { %968 = vmatmul.mubr.msk.bf16.vlgmr.msra.gmra.mxu1 %vm418_vm0, %v1014_v5  ;;  %972 = vmatpush3.bf16.msra.mxu0 %v564_v12 }
  0x16   : > { %978 = vmatpush3.bf16.msra.mxu1 %v637_v13  ;;  %973 = vmatprep.mubr.msk.bf16.mxu0 %vm418_vm0, %v1015_v10 }
  0x17   : > { %979 = vmatprep.mubr.msk.bf16.mxu1 %vm418_vm0, %v1016_v11 }
  0x1c   : > { %974 = vmatmul.mubr.msk.bf16.vlgmr.msra.gmra.mxu0 %vm418_vm0, %v1017_v14 }
  0x1d   : > { %980 = vmatmul.mubr.msk.bf16.vlgmr.msra.gmra.mxu1 %vm418_vm0, %v1018_v15 }
  0xd4   : > { %v963_v16 = vpop.f32.mrf.mxu0 }
  0xd5   : > { %v969_v17 = vpop.f32.mrf.mxu1 }
  0xd6   : > { %v463_v18 = vpop.f32.mrf.mxu0  ;;  %v540_v24 = vadd.f32 %v969_v17, %v963_v16 }
  0xd7   : > { %v531_v19 = vpop.f32.mrf.mxu1 }
  0xd8   : > { %v964_v20 = vpop.f32.mrf.mxu0  ;;  %v532_v27 = vadd.f32 %v531_v19, %v463_v18 }
  0xd9   : > { %v970_v21 = vpop.f32.mrf.mxu1 }
  0xda   : > { %v466_v22 = vpop.f32.mrf.mxu0  ;;  %v543_v31 = vadd.f32 %v970_v21, %v964_v20 }
  0xdb   : > { %v534_v23 = vpop.f32.mrf.mxu1 }
  0xdc   : > { %v975_v25 = vpop.f32.mrf.mxu0  ;;  %v535_v36 = vadd.f32 %v534_v23, %v466_v22 }
  0xdd   : > { %v981_v26 = vpop.f32.mrf.mxu1  ;;  %v617_v28 = vadd.f32 %v975_v25, %v540_v24 }
  0xde   : > { %v600_v29 = vpop.f32.mrf.mxu0 }
  0xdf   : > { %v673_v30 = vpop.f32.mrf.mxu1  ;;  %v690_v32 = vadd.f32 %v981_v26, %v617_v28  ;;  %v615_v33 = vadd.f32 %v600_v29, %v532_v27 }
  0xe0   : > { %v976_v34 = vpop.f32.mrf.mxu0 }
  0xe1   : > { %v982_v35 = vpop.f32.mrf.mxu1  ;;  %v688_v37 = vadd.f32 %v673_v30, %v615_v33  ;;  %v618_v38 = vadd.f32 %v976_v34, %v543_v31  ;;  %v699_v39 = vsel %vm692_vm2, %v690_v32, 0.0  ;;  %v712_v53 = vmul.f32 %v690_v32, %v690_v32 }
  0xe2   : > { %v603_v40 = vpop.f32.mrf.mxu0  ;;  %700 = vadd.xlane.f32.xlu1 %v699_v39 }
  0xe3   : > { %v691_v41 = vadd.f32 %v982_v35, %v618_v38  ;;  %v616_v42 = vadd.f32 %v603_v40, %v535_v36  ;;  %v693_v43 = vsel %vm692_vm2, %v688_v37, 0.0  ;;  %v710_v44 = vmul.f32 %v688_v37, %v688_v37  ;;  %v676_v45 = vpop.f32.mrf.mxu1 }
  0xe4   : > { %694 = vadd.xlane.f32.xlu0 %v693_v43  ;;  %v720_v55 = vsel %vm692_vm2, %v712_v53, 0.0 }
  0xe5   : > { %v689_v46 = vadd.f32 %v676_v45, %v616_v42  ;;  %v702_v47 = vsel %vm692_vm2, %v691_v41, 0.0  ;;  %v714_v48 = vsel %vm692_vm2, %v710_v44, 0.0  ;;  %v713_v51 = vmul.f32 %v691_v41, %v691_v41 }
  0xe6   : > { %703 = vadd.xlane.f32.xlu1 %v702_v47 }
  0xe7   : > { %v711_v49 = vmul.f32 %v689_v46, %v689_v46  ;;  %v696_v52 = vsel %vm692_vm2, %v689_v46, 0.0  ;;  %v723_v54 = vsel %vm692_vm2, %v713_v51, 0.0 }
  0xe8   : > { %715 = vadd.xlane.f32.xlu0 %v714_v48 }
  0xe9   : > { %v717_v50 = vsel %vm692_vm2, %v711_v49, 0.0 }
  0xea   : > { %718 = vadd.xlane.f32.xlu1 %v717_v50 }
  0xec   : > { %697 = vadd.xlane.f32.xlu0 %v696_v52 }
  0xee   : > { %724 = vadd.xlane.f32.xlu1 %v723_v54 }
  0xf0   : > { %721 = vadd.xlane.f32.xlu0 %v720_v55 }
 0x16b   : > { %v701_v56 = vpop.xlane.xlu1 %700 }
 0x16c   : > { %708 = vst.msk [vmem:[%s379_s13 + $0x10] sm:$0xff] %vm705_vm3, %v701_v56 }
 0x16d   : > { %v695_v57 = vpop.xlane.xlu0 %694 }
 0x16e   : > { %706 = vst.msk [vmem:[%s379_s13] sm:$0xff] %vm705_vm3, %v695_v57 }
 0x16f   : > { %v704_v58 = vpop.xlane.xlu1 %703 }
 0x170   : > { %709 = vst.msk [vmem:[%s379_s13 + $0x18] sm:$0xff] %vm705_vm3, %v704_v58 }
 0x171   : > { %v716_v59 = vpop.xlane.xlu0 %715 }
 0x172   : > { %726 = vst.msk [vmem:[%s388_s16] sm:$0xff] %vm705_vm3, %v716_v59 }
 0x173   : > { %v719_v60 = vpop.xlane.xlu1 %718 }
 0x174   : > { %727 = vst.msk [vmem:[%s388_s16 + $0x8] sm:$0xff] %vm705_vm3, %v719_v60 }
 0x175   : > { %v698_v61 = vpop.xlane.xlu0 %697 }
 0x176   : > { %707 = vst.msk [vmem:[%s379_s13 + $0x8] sm:$0xff] %vm705_vm3, %v698_v61 }
 0x177   : > { %v725_v62 = vpop.xlane.xlu1 %724 }
 0x178   : > { %729 = vst.msk [vmem:[%s388_s16 + $0x18] sm:$0xff] %vm705_vm3, %v725_v62 }
 0x179   : > { %v722_v63 = vpop.xlane.xlu0 %721 }
 0x17a   : > { %728 = vst.msk [vmem:[%s388_s16 + $0x10] sm:$0xff] %vm705_vm3, %v722_v63 }
 0x17b PF: > { %s17_s23 = sadd.s32 1, %s1041_s23   ;;  %s1190_s21 = smov %s1037_s22 }
 0x17c   : > { %p14_p5 = scmp.ge.s32.totalorder %s17_s23, 4   ;;  %s1191_s22 = smov %s1193_s24 }
 0x17e   :  { %16 = sbr.rel (!%p14_p5) target bundleno = 2 (0x2), region = 91 }

</bundles_post_ra>
